<compile_context>
chip_gen: v7x
topology: tpu7x:2x2x1
jax: 0.10.0
libtpu: 0.0.40
codegen_flags: <defaults>
</compile_context>

<pallas_src>
import functools

import jax
import jax.numpy as jnp
from jax.experimental import pallas as pl
from jax.experimental.pallas import tpu as pltpu

IN_FEATURES = 68
HIDDEN = 256
OUT_FEATURES = 4


def _round_up(x, m):
    return (x + m - 1) // m * m


def _bf16_tanh_supported():
    """bf16 VPU/EUP exists on v6e/v7x; v5e and older must stay in f32."""
    try:
        kind = jax.devices()[0].device_kind.lower()
    except Exception:  # pragma: no cover - defensive; f32 is always safe
        return False
    return any(tag in kind for tag in ("v6", "v7", "7x"))


_BF16_TANH = _bf16_tanh_supported()


def value_net_kernel(x_ref, w1_ref, b1_ref, w2_ref, b2_ref, out_ref, *, bf16_tanh):
    # x:  (TB, 68) f32    w1: (68, 256) bf16   b1: (1, 256) f32
    # w2: (256, 4) bf16   b2: (1, 4)    f32    out: (TB, 4) f32
    # In-kernel bf16 cast of the activation tile; Mosaic zero-pads K=68 for the MXU.
    x = x_ref[...].astype(jnp.bfloat16)
    z = jnp.dot(x, w1_ref[...], preferred_element_type=jnp.float32) + b1_ref[...]
    if bf16_tanh:
        # v6e/v7x: bf16 EUP path, ~2x tanh throughput; h1 is bf16 for fc2 anyway.
        h1 = jnp.tanh(z.astype(jnp.bfloat16))
    else:
        # v5e and older: no bf16 EUP/VPU -> keep tanh in f32, cast afterwards.
        h1 = jnp.tanh(z).astype(jnp.bfloat16)
    h2 = jnp.dot(h1, w2_ref[...], preferred_element_type=jnp.float32) + b2_ref[...]
    out_ref[...] = h2.astype(out_ref.dtype)


@functools.partial(jax.jit, static_argnames=("block_b", "bf16_tanh"))
def _value_network_forward(state, w1, b1, w2, b2, block_b, bf16_tanh):
    """state: (B, 68) f32.  w1: (68, 256), b1: (256,), w2: (256, 4), b2: (4,).
    Returns (B, 4) f32."""
    B = state.shape[0]
    # Large tiles amortize per-grid-step overhead; small batches use one tile
    # rounded up to a sublane multiple of 8 (f32 input -> 8 is sufficient).
    TB = _round_up(min(block_b, max(8, _round_up(B, 8))), 8)
    grid = (pl.cdiv(B, TB),)

    # Weights/biases are tiny: cast once per call, stay resident in VMEM.
    w1b = w1.astype(jnp.bfloat16)
    w2b = w2.astype(jnp.bfloat16)
    b1_2d = b1.reshape(1, HIDDEN).astype(jnp.float32)
    b2_2d = b2.reshape(1, OUT_FEATURES).astype(jnp.float32)

    cost = pl.CostEstimate(
        flops=2 * B * (IN_FEATURES * HIDDEN + HIDDEN * OUT_FEATURES),
        transcendentals=B * HIDDEN,
        bytes_accessed=(state.size * 4 + w1b.size * 2 + b1_2d.size * 4
                        + w2b.size * 2 + b2_2d.size * 4
                        + B * OUT_FEATURES * 4),
    )

    kernel = functools.partial(value_net_kernel, bf16_tanh=bf16_tanh)

    out = pl.pallas_call(
        kernel,
        out_shape=jax.ShapeDtypeStruct((B, OUT_FEATURES), jnp.float32),
        grid_spec=pltpu.PrefetchScalarGridSpec(
            num_scalar_prefetch=0,
            grid=grid,
            in_specs=[
                # x: f32, tiled over batch (double-buffered by the pipeline).
                # Last dim 68 == full array dim, so no (8,128) padding needed.
                pl.BlockSpec((TB, IN_FEATURES), lambda i: (i, 0)),
                # Weights / biases: constant index_map -> resident in VMEM.
                pl.BlockSpec((IN_FEATURES, HIDDEN), lambda i: (0, 0)),
                pl.BlockSpec((1, HIDDEN), lambda i: (0, 0)),
                pl.BlockSpec((HIDDEN, OUT_FEATURES), lambda i: (0, 0)),
                pl.BlockSpec((1, OUT_FEATURES), lambda i: (0, 0)),
            ],
            out_specs=pl.BlockSpec((TB, OUT_FEATURES), lambda i: (i, 0)),
        ),
        compiler_params=pltpu.CompilerParams(
            dimension_semantics=("parallel",),   # shard batch grid across TCs (v7x)
            vmem_limit_bytes=32 * 1024 * 1024,   # safe on v5e/v6e/v7x
        ),
        cost_estimate=cost,
    )(state, w1b, b1_2d, w2b, b2_2d)

    return out


def value_network_forward(state, w1, b1, w2, b2, block_b=2048):
    return _value_network_forward(state, w1, b1, w2, b2, block_b, _BF16_TANH)


def init_params(key):
    """PyTorch Linear default init: U(-1/sqrt(fan_in), 1/sqrt(fan_in)).
    Weights stored as (in, out) = W.T relative to PyTorch's (out, in)."""
    k1, k2, k3, k4 = jax.random.split(key, 4)
    bound1 = 1.0 / jnp.sqrt(68.0)
    bound2 = 1.0 / jnp.sqrt(256.0)
    w1 = jax.random.uniform(k1, (IN_FEATURES, HIDDEN), jnp.float32, -bound1, bound1)
    b1 = jax.random.uniform(k2, (HIDDEN,), jnp.float32, -bound1, bound1)
    w2 = jax.random.uniform(k3, (HIDDEN, OUT_FEATURES), jnp.float32, -bound2, bound2)
    b2 = jax.random.uniform(k4, (OUT_FEATURES,), jnp.float32, -bound2, bound2)
    return w1, b1, w2, b2


def _reference_mirror(state, w1, b1, w2, b2, bf16_tanh):
    """Plain-JAX reference mirroring the kernel's bf16 cast points."""
    x = state.astype(jnp.bfloat16)
    w1b = w1.astype(jnp.bfloat16)
    w2b = w2.astype(jnp.bfloat16)
    z = jnp.dot(x, w1b, preferred_element_type=jnp.float32) + b1
    if bf16_tanh:
        h1 = jnp.tanh(z.astype(jnp.bfloat16))
    else:
        h1 = jnp.tanh(z).astype(jnp.bfloat16)
    return jnp.dot(h1, w2b, preferred_element_type=jnp.float32) + b2


def _reference_f32(state, w1, b1, w2, b2):
    return jnp.tanh(state @ w1 + b1) @ w2 + b2


if __name__ == "__main__":
    key = jax.random.PRNGKey(0)
    pkey, xkey, xkey2 = jax.random.split(key, 3)
    w1, b1, w2, b2 = init_params(pkey)

    # Small test (single grid step).
    B = 8
    state = jax.random.normal(xkey, (B, IN_FEATURES), jnp.float32)
    out = jax.block_until_ready(value_network_forward(state, w1, b1, w2, b2))
    assert out.shape == (B, OUT_FEATURES)
    ref_m = _reference_mirror(state, w1, b1, w2, b2, _BF16_TANH)
    ref_f = _reference_f32(state, w1, b1, w2, b2)
    assert jnp.allclose(out, ref_m, atol=5e-3, rtol=5e-3), "mismatch vs bf16-mirrored reference"
    assert jnp.allclose(out, ref_f, atol=5e-2, rtol=5e-2), "mismatch vs f32 reference"

    # Non-tile-multiple batch with a small tile: exercises multi-step grid plus
    # the masked partial last block (no host-side batch padding anymore).
    B2 = 300
    state2 = jax.random.normal(xkey2, (B2, IN_FEATURES), jnp.float32)
    out2 = jax.block_until_ready(
        value_network_forward(state2, w1, b1, w2, b2, block_b=128))
    assert out2.shape == (B2, OUT_FEATURES)
    ref2 = _reference_mirror(state2, w1, b1, w2, b2, _BF16_TANH)
    assert jnp.allclose(out2, ref2, atol=5e-3, rtol=5e-3), "mismatch vs reference (tiled batch)"
    assert bool(jnp.all(jnp.isfinite(out2))), "non-finite values in output"

    print("KERNEL_OK")
</pallas_src>

<mosaic_0001>
module attributes {stable_mosaic.version = 11 : i64} {
  func.func @value_net_kernel(%arg0: i32, %arg1: memref<8x68xf32, #tpu.memory_space<vmem>>, %arg2: memref<68x256xbf16, #tpu.memory_space<vmem>>, %arg3: memref<1x256xf32, #tpu.memory_space<vmem>>, %arg4: memref<256x4xbf16, #tpu.memory_space<vmem>>, %arg5: memref<1x4xf32, #tpu.memory_space<vmem>>, %arg6: memref<8x4xf32, #tpu.memory_space<vmem>>) attributes {dimension_semantics = [#tpu.dimension_semantics<parallel>], iteration_bounds = array<i64: 1>, scalar_prefetch = 0 : i64, scratch_operands = 0 : i64, tpu.core_type = #tpu.core_type<tc>, window_params = [{transform_indices = @transform_0, window_bounds = array<i64: 8, 68>}, {pipeline_mode = #tpu.pipeline_mode<synchronous>, transform_indices = @transform_1, window_bounds = array<i64: 68, 256>}, {pipeline_mode = #tpu.pipeline_mode<synchronous>, transform_indices = @transform_2, window_bounds = array<i64: 1, 256>}, {pipeline_mode = #tpu.pipeline_mode<synchronous>, transform_indices = @transform_3, window_bounds = array<i64: 256, 4>}, {pipeline_mode = #tpu.pipeline_mode<synchronous>, transform_indices = @transform_4, window_bounds = array<i64: 1, 4>}, {transform_indices = @transform_5, window_bounds = array<i64: 8, 4>}]} {
    %c0 = arith.constant 0 : index
    %c0_0 = arith.constant 0 : index
    %0 = vector.load %arg1[%c0, %c0_0] : memref<8x68xf32, #tpu.memory_space<vmem>>, vector<8x68xf32>
    %1 = arith.truncf %0 : vector<8x68xf32> to vector<8x68xbf16>
    %c0_1 = arith.constant 0 : index
    %c0_2 = arith.constant 0 : index
    %2 = vector.load %arg2[%c0_1, %c0_2] : memref<68x256xbf16, #tpu.memory_space<vmem>>, vector<68x256xbf16>
    %cst = arith.constant dense<0.000000e+00> : vector<8x256xf32>
    %3 = tpu.matmul %1, %2, %cst {dimension_numbers = #tpu.dot_dimension_numbers<[1], [0], [0], [1], [0, 0, 1, 1], [], []>} : vector<8x68xbf16>, vector<68x256xbf16>, vector<8x256xf32> -> vector<8x256xf32>
    %c0_3 = arith.constant 0 : index
    %c0_4 = arith.constant 0 : index
    %4 = vector.load %arg3[%c0_3, %c0_4] : memref<1x256xf32, #tpu.memory_space<vmem>>, vector<1x256xf32>
    %5 = vector.broadcast %4 : vector<1x256xf32> to vector<8x256xf32>
    %6 = arith.addf %3, %5 : vector<8x256xf32>
    %7 = math.tanh %6 : vector<8x256xf32>
    %8 = arith.truncf %7 : vector<8x256xf32> to vector<8x256xbf16>
    %c0_5 = arith.constant 0 : index
    %c0_6 = arith.constant 0 : index
    %9 = vector.load %arg4[%c0_5, %c0_6] : memref<256x4xbf16, #tpu.memory_space<vmem>>, vector<256x4xbf16>
    %cst_7 = arith.constant dense<0.000000e+00> : vector<8x4xf32>
    %10 = tpu.matmul %8, %9, %cst_7 {dimension_numbers = #tpu.dot_dimension_numbers<[1], [0], [0], [1], [0, 0, 1, 1], [], []>} : vector<8x256xbf16>, vector<256x4xbf16>, vector<8x4xf32> -> vector<8x4xf32>
    %c0_8 = arith.constant 0 : index
    %c0_9 = arith.constant 0 : index
    %11 = vector.load %arg5[%c0_8, %c0_9] : memref<1x4xf32, #tpu.memory_space<vmem>>, vector<1x4xf32>
    %12 = vector.broadcast %11 : vector<1x4xf32> to vector<8x4xf32>
    %13 = arith.addf %10, %12 : vector<8x4xf32>
    %c0_10 = arith.constant 0 : index
    %c0_11 = arith.constant 0 : index
    %14 = vector.load %arg6[%c0_10, %c0_11] : memref<8x4xf32, #tpu.memory_space<vmem>>, vector<8x4xf32>
    tpu.vector_store %arg6[%c0_10, %c0_11], %13 {strides = array<i32>} : memref<8x4xf32, #tpu.memory_space<vmem>>, vector<8x4xf32>,
    return
  }
  func.func @transform_0(%arg0: i32) -> (i32, i32) {
    %c0_i32 = arith.constant 0 : i32
    %c0_i32_0 = arith.constant 0 : i32
    return %arg0, %c0_i32 : i32, i32
  }
  func.func @transform_1(%arg0: i32) -> (i32, i32) {
    %c0_i32 = arith.constant 0 : i32
    %c0_i32_0 = arith.constant 0 : i32
    %c0_i32_1 = arith.constant 0 : i32
    return %c0_i32, %c0_i32_0 : i32, i32
  }
  func.func @transform_2(%arg0: i32) -> (i32, i32) {
    %c0_i32 = arith.constant 0 : i32
    %c0_i32_0 = arith.constant 0 : i32
    %c0_i32_1 = arith.constant 0 : i32
    return %c0_i32, %c0_i32_0 : i32, i32
  }
  func.func @transform_3(%arg0: i32) -> (i32, i32) {
    %c0_i32 = arith.constant 0 : i32
    %c0_i32_0 = arith.constant 0 : i32
    %c0_i32_1 = arith.constant 0 : i32
    return %c0_i32, %c0_i32_0 : i32, i32
  }
  func.func @transform_4(%arg0: i32) -> (i32, i32) {
    %c0_i32 = arith.constant 0 : i32
    %c0_i32_0 = arith.constant 0 : i32
    %c0_i32_1 = arith.constant 0 : i32
    return %c0_i32, %c0_i32_0 : i32, i32
  }
  func.func @transform_5(%arg0: i32) -> (i32, i32) {
    %c0_i32 = arith.constant 0 : i32
    %c0_i32_0 = arith.constant 0 : i32
    return %arg0, %c0_i32 : i32, i32
  }
}

</mosaic_0001>

<bundles_post_ra>
// kernel: _value_network_forward.1
= control target key start
LH: loop header
LB: loop body
LE: loop exit
PB: predicated region body
PF: predicated region fallthrough
CT: control target
= control target key end

     0   :  { %v412_v1 = vmov 0   ;;  %vm93_vm0 = vcmask 1041408   ;;  %vm89_vm1 = vcmask 556032   ;;  %v34_v31 = vlaneseq  ;;  %s532_s1 = inlined_call_operand.vmem [shape: bf16[68,256], index: 1, kind: input, shape index: {}]   ;;  %s533_s3 = inlined_call_operand.vmem [shape: bf16[256,4], index: 3, kind: input, shape index: {}]   ;;  %s534_s0 = inlined_call_operand.vmem [shape: f32[8,68], index: 0, kind: input, shape index: {}]   ;;  %s535_s2 = inlined_call_operand.vmem [shape: f32[1,256], index: 2, kind: input, shape index: {}]   ;;  %s536_s4 = inlined_call_operand.vmem [shape: f32[1,4], index: 4, kind: input, shape index: {}]   ;;  %s537_s5 = inlined_call_operand.vmem [shape: f32[8,4], index: 5, kind: output, shape index: {}]  }
   0x1   :  { %v378_v0 = vld [vmem:[%s532_s1 + $0x4] ss:$8 sps:$4 sm:$0xff]   ;;  %132 = vmatprep.mubr.bf16.mxu0 %v412_v1  ;;  %v380_v2 = vld [vmem:[%s532_s1] ss:$8 sps:$4 sm:$0xff]   ;;  %v381_v3 = vld [vmem:[%s532_s1 + $0x14] ss:$8 sps:$4 sm:$0xff]  }
   0x2   :  { %100 = vmatprep.subr.bf16.mxu0 %v378_v0  ;;  %v383_v4 = vld [vmem:[%s532_s1 + $0x10] ss:$8 sps:$4 sm:$0xff]   ;;  %v384_v5 = vld [vmem:[%s532_s1 + $0x24] ss:$8 sps:$4 sm:$0xff]   ;;  %v386_v6 = vld [vmem:[%s532_s1 + $0x20] ss:$8 sps:$4 sm:$0xff]  }
   0x3   :  { %101 = vmatpush1.bf16.msra.mxu0 %v380_v2  ;;  %v31_v7 = vld [vmem:[%s532_s1 + $0x40] sm:$0x33]  ;;  %v387_v8 = vld [vmem:[%s532_s1 + $0x34] ss:$8 sps:$4 sm:$0xff]   ;;  %v394_v11 = vld [vmem:[%s533_s3 + $0x48] sm:$0xff]   ;;  %v35_v32 = vshrl.u32 %v34_v31, 7 }
   0x4   :  { %102 = vmatprep.subr.bf16.mxu0 %v381_v3  ;;  %v392_v9 = vld [vmem:[%s533_s3 + $0x40] sm:$0xff]   ;;  %v395_v12 = vld [vmem:[%s533_s3 + $0x8] sm:$0xff]   ;;  %v334_v13 = vcombine.low %v31_v7, %v31_v7  ;;  %v396_v14 = vld [vmem:[%s533_s3 + $0x50] sm:$0xff]   ;;  %v335_v16 = vcombine.high %v31_v7, %v31_v7  ;;  %vm320_vm2 = vcmask 31744  }
   0x5   :  { %v393_v10 = vld [vmem:[%s533_s3] sm:$0xff]   ;;  %355 = vmatprep.subr.bf16.mxu1 %v392_v9  ;;  %v389_v15 = vld [vmem:[%s532_s1 + $0x30] ss:$8 sps:$4 sm:$0xff]   ;;  %v402_v25 = vld [vmem:[%s533_s3 + $0x68] sm:$0xff]   ;;  %v36_v33 = vsub.s32 0, %v35_v32  ;;  %v40_v35 = vsub.s32 1, %v35_v32 }
   0x6   :  { %356 = vmatpush3.bf16.msra.mxu1 %v393_v10  ;;  %v21_v17 = vld [vmem:[%s534_s0] sm:$0xff]  ;;  %v397_v18 = vld [vmem:[%s533_s3 + $0x10] sm:$0xff]   ;;  %v95_v19 = vsel %vm93_vm0, %v334_v13, 0  ;;  %v398_v20 = vld [vmem:[%s533_s3 + $0x58] sm:$0xff]  }
   0x7   :  { %103 = vmatpush1.bf16.msra.mxu0 %v383_v4  ;;  %357 = vmatprep.subr.bf16.mxu1 %v394_v11  ;;  %v399_v21 = vld [vmem:[%s533_s3 + $0x18] sm:$0xff]   ;;  %v22_v22 = vpack.c.bf16 %v21_v17, %v21_v17  ;;  %v400_v23 = vld [vmem:[%s533_s3 + $0x60] sm:$0xff]   ;;  %v403_v26 = vld [vmem:[%s533_s3 + $0x28] sm:$0xff]  }
   0x8   :  { %104 = vmatprep.subr.bf16.mxu0 %v384_v5  ;;  %v401_v24 = vld [vmem:[%s533_s3 + $0x20] sm:$0xff]   ;;  %v404_v27 = vld [vmem:[%s533_s3 + $0x70] sm:$0xff]   ;;  %v406_v29 = vld [vmem:[%s533_s3 + $0x78] sm:$0xff]  }
   0x9   :  { %v405_v28 = vld [vmem:[%s533_s3 + $0x30] sm:$0xff]   ;;  %v407_v30 = vld [vmem:[%s533_s3 + $0x38] sm:$0xff]   ;;  %v32_v34 = vld [vmem:[%s535_s2] sm:$0x3] }
   0xa   :  { %358 = vmatpush3.bf16.msra.mxu1 %v395_v12  ;;  %v37_v36 = vrot.slane %v32_v34, %v36_v33  ;;  %v41_v37 = vrot.slane %v32_v34, %v40_v35  ;;  %v338_v49 = vld [vmem:[%s536_s4] ss:$0 sm:$0xff] }
   0xb   :  { %105 = vmatpush1.bf16.msra.mxu0 %v386_v6  ;;  %359 = vmatprep.subr.bf16.mxu1 %v396_v14 }
   0xc   :  { %106 = vmatprep.subr.bf16.mxu0 %v387_v8 }
   0xe   :  { %360 = vmatpush3.bf16.msra.mxu1 %v397_v18 }
   0xf   :  { %107 = vmatpush1.bf16.msra.mxu0 %v389_v15  ;;  %361 = vmatprep.subr.bf16.mxu1 %v398_v20 }
  0x10   :  { %336 = vmatprep.subr.msk.bf16.mxu0 %vm93_vm0, %v335_v16 }
  0x12   :  { %362 = vmatpush3.bf16.msra.mxu1 %v399_v21 }
  0x13   :  { %109 = vmatpush1.bf16.msra.mxu0 %v95_v19  ;;  %363 = vmatprep.subr.bf16.mxu1 %v400_v23 }
  0x16   :  { %337 = vmatmul.mubr.msk.bf16.vlgmr.msra.gmra.mrb[0].mxu0 %vm89_vm1, %v22_v22  ;;  %364 = vmatpush3.bf16.msra.mxu1 %v401_v24 }
  0x17   :  { %365 = vmatprep.subr.bf16.mxu1 %v402_v25 }
  0x1a   :  { %366 = vmatpush3.bf16.msra.mxu1 %v403_v26 }
  0x1b   :  { %367 = vmatprep.subr.bf16.mxu1 %v404_v27 }
  0x1e   :  { %368 = vmatpush3.bf16.msra.mxu1 %v405_v28 }
  0x1f   :  { %369 = vmatprep.subr.bf16.mxu1 %v406_v29 }
  0x22   :  { %370 = vmatpush3.bf16.msra.mxu1 %v407_v30 }
  0xe9   :  { %v134_v38 = vpop.f32.mrb[0].mxu0 }
  0xea   :  { %v135_v39 = vadd.f32 %v134_v38, %v37_v36  ;;  %v136_v40 = vpop.f32.mrb[1].mxu0 }
  0xeb   :  { %v137_v41 = vadd.f32 %v136_v40, %v41_v37  ;;  %v138_v42 = vpop.f32.mrb[2].mxu0 }
  0xec   :  { %408 = vtanh.f32 %v135_v39  ;;  %v139_v43 = vpop.f32.mrb[3].mxu0 }
  0xed   :  { %410 = vtanh.f32 %v137_v41 }
  0xf6   :  { %v409_v44 = vpop.eup %408 }
  0xf7   :  { %v411_v45 = vpop.eup %410  ;;  %v143_v47 = vpack.c.bf16 %v409_v44, %v409_v44 }
  0xf8   :  { %v144_v46 = vpack.c.bf16 %v411_v45, %v411_v45 }
  0xfa   :  { %312 = vmatprep.mubr.bf16.mxu1 %v144_v46 }
  0xfb   :  { %313 = vmatmul.mubr.bf16.vlgmr.msra.gmra.mrb[0].mxu1 %v143_v47 }
 0x1ce   :  { %v371_v48 = vpop.f32.mrb[0].mxu1 }
 0x1cf   :  { %v372_v50 = vpop.f32.mrb[1].mxu1 }
 0x1d0   :  { %v373_v51 = vadd.f32 %v372_v50, %v371_v48  ;;  %v374_v52 = vpop.f32.mrb[2].mxu1 }
 0x1d1   :  { %v375_v53 = vpop.f32.mrb[3].mxu1 }
 0x1d2   :  { %v315_v54 = vadd.f32 %v373_v51, %v338_v49 }
 0x1d4   :  { %321 = vst.msk [vmem:[%s537_s5] sm:$0xff] %vm320_vm2, %v315_v54 }

</bundles_post_ra>
